<compile_context>
chip_gen: v7x
topology: tpu7x:2x2x1
jax: 0.10.0
libtpu: 0.0.40
codegen_flags: <defaults>
</compile_context>

<pallas_src>
import functools

import jax
import jax.numpy as jnp
from jax.experimental import pallas as pl
from jax.experimental.pallas import tpu as pltpu


def _round_up(x: int, m: int) -> int:
    return -(-x // m) * m


def _device_kind() -> str:
    try:
        return jax.devices()[0].device_kind.lower()
    except Exception:
        return ""


def _default_num_blocks() -> int:
    # v7x has 2 TensorCores per chip -> 2 equal "parallel" blocks.
    # v5e / v6e have a single TC -> the grid is just a serial loop, use 1 block.
    return 2 if "v7" in _device_kind() else 1


def _default_dtypes():
    """Returns (act_dtype, mxu_dtype) per generation."""
    kind = _device_kind()
    if "v7" in kind or "v6" in kind:
        return jnp.bfloat16, jnp.bfloat16     # bf16 EUP/VPU available
    if "v5" in kind:
        return jnp.float32, jnp.bfloat16      # f32 tanh (no bf16 VPU/EUP), bf16 MXU
    return jnp.float32, jnp.float32


def _dnn_sep_kernel(x_ref,                  # (2, tm)    lane-dense input block
                    w_in_ref, b_in_ref,     # (Wp, 1), (Wp, 1)   net  Linear(1, W)
                    w_in1_ref, b_in1_ref,   # (Wp, 1), (Wp, 1)   net1 Linear(1, W)
                    w_h_ref, b_h_ref,       # (Wp, Wp), (Wp, 1)  SHARED hidden Linear(W, W)
                    w_out2_ref,             # (2, Wp)  row0 = net out w, row1 = net1 out w
                    b_out_sm,               # (2,) in SMEM: [b_out, b_out1]
                    o_ref,                  # (2, tm)    lane-dense output block
                    *, depth: int, act_dtype, mxu_dtype):
    tm = x_ref.shape[1]
    Wp = w_h_ref.shape[0]

    x = x_ref[...]                                   # (2, tm) f32
    a = x[0:1, :]                                    # (1, tm) -> net
    c = x[1:2, :]                                    # (1, tm) -> net1

    # Input Linear(1, W) in transposed orientation: (Wp,1)*(1,tm) + (Wp,1).
    h0 = w_in_ref[...] * a + b_in_ref[...]           # (Wp, tm) f32
    h1 = w_in1_ref[...] * c + b_in1_ref[...]         # (Wp, tm) f32

    # Fuse both streams along lanes.  The concat is folded into the first tanh
    # (cast before tanh so it runs on the bf16 EUP path where available), so
    # the copied tensor is act_dtype and half the bytes in bf16.
    t = jnp.concatenate([jnp.tanh(h0.astype(act_dtype)),
                         jnp.tanh(h1.astype(act_dtype))], axis=-1)  # (Wp, 2*tm)

    # Hoist loop invariants (JAX does not CSE broadcast_in_dim / converts).
    w_h = w_h_ref[...].astype(mxu_dtype)                            # (Wp, Wp)
    b_h = jnp.broadcast_to(b_h_ref[...], (Wp, 2 * tm))              # f32

    def body(_, tt):
        hh = jnp.dot(w_h, tt.astype(mxu_dtype),
                     preferred_element_type=jnp.float32) + b_h      # f32 accumulate
        return jnp.tanh(hh.astype(act_dtype))

    t = jax.lax.fori_loop(0, depth, body, t, unroll=True)

    # Both output Linear(W, 1) heads in one small matmul -> lane-dense rows.
    y = jnp.dot(w_out2_ref[...].astype(mxu_dtype), t.astype(mxu_dtype),
                preferred_element_type=jnp.float32)                 # (2, 2*tm)
    # Write rows directly (no epilogue concat / relayout).
    o_ref[0:1, :] = (y[0:1, :tm] + b_out_sm[0]).astype(o_ref.dtype)
    o_ref[1:2, :] = (y[1:2, tm:] + b_out_sm[1]).astype(o_ref.dtype)


def dnn_sep_forward_t(x_t, params, *, depth: int, n_blocks: int | None = None,
                      act_dtype=None, mxu_dtype=None):
    """Lane-dense entry point: x_t is (2, N) float32, returns (2, N) float32."""
    two, N = x_t.shape
    assert two == 2, "DNN_sep separates exactly two scalar inputs"
    Wp = params["w_h"].shape[0]

    if n_blocks is None:
        n_blocks = _default_num_blocks()
    d_act, d_mxu = _default_dtypes()
    if act_dtype is None:
        act_dtype = d_act
    if mxu_dtype is None:
        mxu_dtype = d_mxu

    # Lane-aligned block width; pad N up to n_blocks * tm.
    tm = max(128, _round_up(-(-N // n_blocks), 128))
    Np = n_blocks * tm
    if Np != N:
        x_t = jnp.pad(x_t, ((0, 0), (0, Np - N)))

    full = lambda shape: pl.BlockSpec(shape, lambda i: (0, 0))
    kernel = functools.partial(_dnn_sep_kernel, depth=depth,
                               act_dtype=act_dtype, mxu_dtype=mxu_dtype)

    out_t = pl.pallas_call(
        kernel,
        out_shape=jax.ShapeDtypeStruct((2, Np), jnp.float32),
        grid=(n_blocks,),
        in_specs=[
            pl.BlockSpec((2, tm), lambda i: (0, i)),            # x (lane-dense)
            full((Wp, 1)), full((Wp, 1)),                       # w_in,  b_in
            full((Wp, 1)), full((Wp, 1)),                       # w_in1, b_in1
            full((Wp, Wp)), full((Wp, 1)),                      # shared w_h, b_h
            full((2, Wp)),                                      # stacked output weights
            pl.BlockSpec(memory_space=pltpu.MemorySpace.SMEM),  # (2,) output biases
        ],
        out_specs=pl.BlockSpec((2, tm), lambda i: (0, i)),      # lane-dense output
        compiler_params=pltpu.CompilerParams(
            dimension_semantics=("parallel",)),
    )(x_t,
      params["w_in"], params["b_in"],
      params["w_in1"], params["b_in1"],
      params["w_h"], params["b_h"],
      params["w_out2"], params["b_out2"])

    return out_t[:, :N]


def dnn_sep_forward(x, params, *, depth: int, **kw):
    """Convenience (N, 2) -> (N, 2) wrapper; relayout happens outside the kernel."""
    return jnp.transpose(dnn_sep_forward_t(jnp.transpose(x), params,
                                           depth=depth, **kw))


def init_params(key, width: int):
    """Deterministic synthetic params following torch Linear init, stored
    zero-padded to Wp = round_up(width, 16) (sublane-friendly for f32 and bf16)
    in the transposed layout the kernel consumes (features on sublanes).
    Zero padding leaves the math unchanged (pad rows/cols contribute 0,
    tanh(0) = 0)."""
    W = width
    Wp = max(16, _round_up(W, 16))
    ks = jax.random.split(key, 10)
    u = lambda k, shape, fan_in: jax.random.uniform(
        k, shape, jnp.float32, -1.0 / (fan_in ** 0.5), 1.0 / (fan_in ** 0.5))

    # torch shapes: Linear weight (out, in), bias (out,)
    in_w,   in_b   = u(ks[0], (W, 1), 1.0),       u(ks[1], (W,), 1.0)
    in1_w,  in1_b  = u(ks[2], (W, 1), 1.0),       u(ks[3], (W,), 1.0)
    h_w,    h_b    = u(ks[4], (W, W), float(W)),  u(ks[5], (W,), float(W))
    out_w,  out_b  = u(ks[6], (1, W), float(W)),  u(ks[7], (1,), float(W))
    out1_w, out1_b = u(ks[8], (1, W), float(W)),  u(ks[9], (1,), float(W))

    pad_col = lambda v: jnp.pad(v.reshape(-1, 1), ((0, Wp - W), (0, 0)))
    return {
        "w_in":  pad_col(in_w),  "b_in":  pad_col(in_b),
        "w_in1": pad_col(in1_w), "b_in1": pad_col(in1_b),
        "w_h":   jnp.pad(h_w, ((0, Wp - W), (0, Wp - W))),   # raw (out, in), shared
        "b_h":   pad_col(h_b),
        "w_out2": jnp.pad(jnp.concatenate([out_w, out1_w], axis=0),
                          ((0, 0), (0, Wp - W))),            # (2, Wp)
        "b_out2": jnp.concatenate([out_b, out1_b]),          # (2,)
    }


def dnn_sep_reference(x, params, *, depth: int):
    """Pure-JAX reference mirroring the PyTorch forward (row orientation;
    independent code path from the kernel, which runs column orientation)."""
    hi = jax.lax.Precision.HIGHEST
    w_h_t = params["w_h"].T            # h @ weight.T
    b_h = params["b_h"][:, 0]

    def run(col, w_in, b_in, w_out_row, b_out):
        h = col * w_in[:, 0] + b_in[:, 0]                              # (N, Wp)
        for _ in range(depth):
            h = jnp.dot(jnp.tanh(h), w_h_t, precision=hi) + b_h
        return jnp.dot(jnp.tanh(h), w_out_row, precision=hi)[:, None] + b_out

    y0 = run(x[:, 0:1], params["w_in"],  params["b_in"],
             params["w_out2"][0], params["b_out2"][0])
    y1 = run(x[:, 1:2], params["w_in1"], params["b_in1"],
             params["w_out2"][1], params["b_out2"][1])
    return jnp.concatenate([y0, y1], axis=-1)


if __name__ == "__main__":
    # Module implies inputsize == 2, outputsize == 2.
    batch, width, depth = 200, 32, 3     # non-multiple-of-128 batch exercises padding

    key = jax.random.PRNGKey(0)
    kx, kp = jax.random.split(key)
    x = jax.random.normal(kx, (batch, 2), jnp.float32)
    params = init_params(kp, width)

    # Relayout to the lane-dense (2, N) layout once, outside the kernel path.
    x_t = jnp.transpose(x)
    ref = dnn_sep_reference(x, params, depth=depth)

    # 1) Strict f32 check against an independent pure-JAX reference.
    out_f32 = jax.block_until_ready(
        dnn_sep_forward_t(x_t, params, depth=depth,
                          act_dtype=jnp.float32, mxu_dtype=jnp.float32))
    assert out_f32.shape == (2, batch)
    err_f32 = float(jnp.max(jnp.abs(jnp.transpose(out_f32) - ref)))
    assert jnp.allclose(jnp.transpose(out_f32), ref, atol=1e-4, rtol=1e-4), err_f32

    # 2) Per-generation fast defaults (bf16 tanh+MXU on v6e/v7x, bf16 MXU-only
    #    operands on v5e, 1 grid block on single-TC chips / 2 on v7x).
    out_fast = jax.block_until_ready(
        dnn_sep_forward_t(x_t, params, depth=depth))
    err_fast = float(jnp.max(jnp.abs(jnp.transpose(out_fast) - ref)))
    assert jnp.allclose(jnp.transpose(out_fast), ref, atol=1e-1, rtol=1e-1), err_fast

    print("KERNEL_OK")
</pallas_src>

<mosaic_0001>
module attributes {stable_mosaic.version = 11 : i64} {
  func.func @_dnn_sep_kernel(%arg0: i32, %arg1: memref<2x256xf32, #tpu.memory_space<vmem>>, %arg2: memref<32x1xf32, #tpu.memory_space<vmem>>, %arg3: memref<32x1xf32, #tpu.memory_space<vmem>>, %arg4: memref<32x1xf32, #tpu.memory_space<vmem>>, %arg5: memref<32x1xf32, #tpu.memory_space<vmem>>, %arg6: memref<32x32xf32, #tpu.memory_space<vmem>>, %arg7: memref<32x1xf32, #tpu.memory_space<vmem>>, %arg8: memref<2x32xf32, #tpu.memory_space<vmem>>, %arg9: memref<2xf32, #tpu.memory_space<smem>>, %arg10: memref<2x256xf32, #tpu.memory_space<vmem>>) attributes {dimension_semantics = [#tpu.dimension_semantics<parallel>], iteration_bounds = array<i64: 1>, scalar_prefetch = 0 : i64, scratch_operands = 0 : i64, tpu.core_type = #tpu.core_type<tc>, window_params = [{transform_indices = @transform_0, window_bounds = array<i64: 2, 256>}, {pipeline_mode = #tpu.pipeline_mode<synchronous>, transform_indices = @transform_1, window_bounds = array<i64: 32, 1>}, {pipeline_mode = #tpu.pipeline_mode<synchronous>, transform_indices = @transform_2, window_bounds = array<i64: 32, 1>}, {pipeline_mode = #tpu.pipeline_mode<synchronous>, transform_indices = @transform_3, window_bounds = array<i64: 32, 1>}, {pipeline_mode = #tpu.pipeline_mode<synchronous>, transform_indices = @transform_4, window_bounds = array<i64: 32, 1>}, {pipeline_mode = #tpu.pipeline_mode<synchronous>, transform_indices = @transform_5, window_bounds = array<i64: 32, 32>}, {pipeline_mode = #tpu.pipeline_mode<synchronous>, transform_indices = @transform_6, window_bounds = array<i64: 32, 1>}, {pipeline_mode = #tpu.pipeline_mode<synchronous>, transform_indices = @transform_7, window_bounds = array<i64: 2, 32>}, {transform_indices = @transform_8, window_bounds = array<i64: 2>}, {transform_indices = @transform_9, window_bounds = array<i64: 2, 256>}]} {
    %c0 = arith.constant 0 : index
    %c0_0 = arith.constant 0 : index
    %0 = vector.load %arg1[%c0, %c0_0] : memref<2x256xf32, #tpu.memory_space<vmem>>, vector<2x256xf32>
    %1 = vector.extract_strided_slice %0 {offsets = [0, 0], sizes = [1, 256], strides = [1, 1]} : vector<2x256xf32> to vector<1x256xf32>
    %2 = vector.extract_strided_slice %0 {offsets = [1, 0], sizes = [1, 256], strides = [1, 1]} : vector<2x256xf32> to vector<1x256xf32>
    %c0_1 = arith.constant 0 : index
    %c0_2 = arith.constant 0 : index
    %3 = vector.load %arg2[%c0_1, %c0_2] : memref<32x1xf32, #tpu.memory_space<vmem>>, vector<32x1xf32>
    %4 = vector.broadcast %3 : vector<32x1xf32> to vector<32x256xf32>
    %5 = vector.broadcast %1 : vector<1x256xf32> to vector<32x256xf32>
    %6 = arith.mulf %4, %5 : vector<32x256xf32>
    %c0_3 = arith.constant 0 : index
    %c0_4 = arith.constant 0 : index
    %7 = vector.load %arg3[%c0_3, %c0_4] : memref<32x1xf32, #tpu.memory_space<vmem>>, vector<32x1xf32>
    %8 = vector.broadcast %7 : vector<32x1xf32> to vector<32x256xf32>
    %9 = arith.addf %6, %8 : vector<32x256xf32>
    %c0_5 = arith.constant 0 : index
    %c0_6 = arith.constant 0 : index
    %10 = vector.load %arg4[%c0_5, %c0_6] : memref<32x1xf32, #tpu.memory_space<vmem>>, vector<32x1xf32>
    %11 = vector.broadcast %10 : vector<32x1xf32> to vector<32x256xf32>
    %12 = vector.broadcast %2 : vector<1x256xf32> to vector<32x256xf32>
    %13 = arith.mulf %11, %12 : vector<32x256xf32>
    %c0_7 = arith.constant 0 : index
    %c0_8 = arith.constant 0 : index
    %14 = vector.load %arg5[%c0_7, %c0_8] : memref<32x1xf32, #tpu.memory_space<vmem>>, vector<32x1xf32>
    %15 = vector.broadcast %14 : vector<32x1xf32> to vector<32x256xf32>
    %16 = arith.addf %13, %15 : vector<32x256xf32>
    %17 = math.tanh %9 : vector<32x256xf32>
    %18 = math.tanh %16 : vector<32x256xf32>
    %19 = tpu.concatenate %17, %18 in 1 : vector<32x256xf32>, vector<32x256xf32> -> vector<32x512xf32>
    %c0_9 = arith.constant 0 : index
    %c0_10 = arith.constant 0 : index
    %20 = vector.load %arg6[%c0_9, %c0_10] : memref<32x32xf32, #tpu.memory_space<vmem>>, vector<32x32xf32>
    %c0_11 = arith.constant 0 : index
    %c0_12 = arith.constant 0 : index
    %21 = vector.load %arg7[%c0_11, %c0_12] : memref<32x1xf32, #tpu.memory_space<vmem>>, vector<32x1xf32>
    %22 = vector.shape_cast %21 : vector<32x1xf32> to vector<32x1xf32>
    %23 = vector.broadcast %22 : vector<32x1xf32> to vector<32x512xf32>
    %c0_i32 = arith.constant 0 : i32
    %cst = arith.constant dense<0.000000e+00> : vector<32x512xf32>
    %24 = tpu.matmul %20, %19, %cst {dimension_numbers = #tpu.dot_dimension_numbers<[1], [0], [0], [1], [0, 0, 1, 1], [], []>} : vector<32x32xf32>, vector<32x512xf32>, vector<32x512xf32> -> vector<32x512xf32>
    %25 = arith.addf %24, %23 : vector<32x512xf32>
    %26 = math.tanh %25 : vector<32x512xf32>
    %c1_i32 = arith.constant 1 : i32
    %cst_13 = arith.constant dense<0.000000e+00> : vector<32x512xf32>
    %27 = tpu.matmul %20, %26, %cst_13 {dimension_numbers = #tpu.dot_dimension_numbers<[1], [0], [0], [1], [0, 0, 1, 1], [], []>} : vector<32x32xf32>, vector<32x512xf32>, vector<32x512xf32> -> vector<32x512xf32>
    %28 = arith.addf %27, %23 : vector<32x512xf32>
    %29 = math.tanh %28 : vector<32x512xf32>
    %c2_i32 = arith.constant 2 : i32
    %cst_14 = arith.constant dense<0.000000e+00> : vector<32x512xf32>
    %30 = tpu.matmul %20, %29, %cst_14 {dimension_numbers = #tpu.dot_dimension_numbers<[1], [0], [0], [1], [0, 0, 1, 1], [], []>} : vector<32x32xf32>, vector<32x512xf32>, vector<32x512xf32> -> vector<32x512xf32>
    %31 = arith.addf %30, %23 : vector<32x512xf32>
    %32 = math.tanh %31 : vector<32x512xf32>
    %c0_15 = arith.constant 0 : index
    %c0_16 = arith.constant 0 : index
    %33 = vector.load %arg8[%c0_15, %c0_16] : memref<2x32xf32, #tpu.memory_space<vmem>>, vector<2x32xf32>
    %cst_17 = arith.constant dense<0.000000e+00> : vector<2x512xf32>
    %34 = tpu.matmul %33, %32, %cst_17 {dimension_numbers = #tpu.dot_dimension_numbers<[1], [0], [0], [1], [0, 0, 1, 1], [], []>} : vector<2x32xf32>, vector<32x512xf32>, vector<2x512xf32> -> vector<2x512xf32>
    %35 = vector.extract_strided_slice %34 {offsets = [0, 0], sizes = [1, 256], strides = [1, 1]} : vector<2x512xf32> to vector<1x256xf32>
    %c0_18 = arith.constant 0 : index
    %36 = memref.load %arg9[%c0_18] : memref<2xf32, #tpu.memory_space<smem>>
    %37 = vector.broadcast %36 : f32 to vector<1x256xf32>
    %38 = arith.addf %35, %37 : vector<1x256xf32>
    %c0_19 = arith.constant 0 : index
    %c0_20 = arith.constant 0 : index
    %39 = vector.load %arg10[%c0_19, %c0_20] : memref<2x256xf32, #tpu.memory_space<vmem>>, vector<1x256xf32>
    tpu.vector_store %arg10[%c0_19, %c0_20], %38 {strides = array<i32>} : memref<2x256xf32, #tpu.memory_space<vmem>>, vector<1x256xf32>,
    %40 = vector.extract_strided_slice %34 {offsets = [1, 256], sizes = [1, 256], strides = [1, 1]} : vector<2x512xf32> to vector<1x256xf32>
    %c1 = arith.constant 1 : index
    %41 = memref.load %arg9[%c1] : memref<2xf32, #tpu.memory_space<smem>>
    %42 = vector.broadcast %41 : f32 to vector<1x256xf32>
    %43 = arith.addf %40, %42 : vector<1x256xf32>
    %c1_21 = arith.constant 1 : index
    %c0_22 = arith.constant 0 : index
    %44 = vector.load %arg10[%c1_21, %c0_22] : memref<2x256xf32, #tpu.memory_space<vmem>>, vector<1x256xf32>
    tpu.vector_store %arg10[%c1_21, %c0_22], %43 {strides = array<i32>} : memref<2x256xf32, #tpu.memory_space<vmem>>, vector<1x256xf32>,
    return
  }
  func.func @transform_0(%arg0: i32) -> (i32, i32) {
    %c0_i32 = arith.constant 0 : i32
    %c0_i32_0 = arith.constant 0 : i32
    return %c0_i32, %arg0 : i32, i32
  }
  func.func @transform_1(%arg0: i32) -> (i32, i32) {
    %c0_i32 = arith.constant 0 : i32
    %c0_i32_0 = arith.constant 0 : i32
    %c0_i32_1 = arith.constant 0 : i32
    return %c0_i32, %c0_i32_0 : i32, i32
  }
  func.func @transform_2(%arg0: i32) -> (i32, i32) {
    %c0_i32 = arith.constant 0 : i32
    %c0_i32_0 = arith.constant 0 : i32
    %c0_i32_1 = arith.constant 0 : i32
    return %c0_i32, %c0_i32_0 : i32, i32
  }
  func.func @transform_3(%arg0: i32) -> (i32, i32) {
    %c0_i32 = arith.constant 0 : i32
    %c0_i32_0 = arith.constant 0 : i32
    %c0_i32_1 = arith.constant 0 : i32
    return %c0_i32, %c0_i32_0 : i32, i32
  }
  func.func @transform_4(%arg0: i32) -> (i32, i32) {
    %c0_i32 = arith.constant 0 : i32
    %c0_i32_0 = arith.constant 0 : i32
    %c0_i32_1 = arith.constant 0 : i32
    return %c0_i32, %c0_i32_0 : i32, i32
  }
  func.func @transform_5(%arg0: i32) -> (i32, i32) {
    %c0_i32 = arith.constant 0 : i32
    %c0_i32_0 = arith.constant 0 : i32
    %c0_i32_1 = arith.constant 0 : i32
    return %c0_i32, %c0_i32_0 : i32, i32
  }
  func.func @transform_6(%arg0: i32) -> (i32, i32) {
    %c0_i32 = arith.constant 0 : i32
    %c0_i32_0 = arith.constant 0 : i32
    %c0_i32_1 = arith.constant 0 : i32
    return %c0_i32, %c0_i32_0 : i32, i32
  }
  func.func @transform_7(%arg0: i32) -> (i32, i32) {
    %c0_i32 = arith.constant 0 : i32
    %c0_i32_0 = arith.constant 0 : i32
    %c0_i32_1 = arith.constant 0 : i32
    return %c0_i32, %c0_i32_0 : i32, i32
  }
  func.func @transform_8(%arg0: i32) -> i32 {
    %c0_i32 = arith.constant 0 : i32
    %c0_i32_0 = arith.constant 0 : i32
    return %c0_i32 : i32
  }
  func.func @transform_9(%arg0: i32) -> (i32, i32) {
    %c0_i32 = arith.constant 0 : i32
    %c0_i32_0 = arith.constant 0 : i32
    return %c0_i32, %arg0 : i32, i32
  }
}

</mosaic_0001>

<bundles_post_ra>
// kernel: tpu_custom_call.1
= control target key start
LH: loop header
LB: loop body
LE: loop exit
PB: predicated region body
PF: predicated region fallthrough
CT: control target
= control target key end

     0   :  { %14 = vsyncpa [#allocation4], 0  ;;  %s1625_s0 = inlined_call_operand.vmem [shape: f32[2,256], index: 0, kind: input, shape index: {}]   ;;  %s1626_s1 = inlined_call_operand.vmem [shape: f32[32,1], index: 1, kind: input, shape index: {}]   ;;  %s1627_s2 = inlined_call_operand.vmem [shape: f32[32,1], index: 2, kind: input, shape index: {}]   ;;  %s1628_s3 = inlined_call_operand.vmem [shape: f32[32,1], index: 3, kind: input, shape index: {}]   ;;  %s1629_s4 = inlined_call_operand.vmem [shape: f32[32,1], index: 4, kind: input, shape index: {}]   ;;  %s1630_s5 = inlined_call_operand.vmem [shape: f32[32,32], index: 5, kind: input, shape index: {}]   ;;  %s1631_s6 = inlined_call_operand.vmem [shape: f32[32,1], index: 6, kind: input, shape index: {}]   ;;  %s1632_s7 = inlined_call_operand.vmem [shape: f32[2,32], index: 7, kind: input, shape index: {}]   ;;  %s1633_s8 = inlined_call_operand.vmem [shape: f32[2], index: 8, kind: input, shape index: {}]   ;;  %s1634_s9 = inlined_call_operand.hbm [shape: f32[2,256], index: 9, kind: output, shape index: {}]  }
   0x1   :  { %15 = vsyncpa [#allocation3], 0  ;;  %s38_s11 = sshll.u32 %s1633_s8, 4  ;;  %s39_s11 = int_to_ptr.vmem [resolvable:$true] %s38_s11 }
   0x2   :  { %s1290_s12 = scalar_lea.vmem %s39_s11, 16  ;;  %p1295_p1 = scmp.lt.s32.totalorder %s39_s11, %s39_s11 }
   0x3   :  { %p1291_p0 = scmp.ne.s32.totalorder %s39_s11, %s1290_s12  ;;  %p1296_p2 = scmp.lt.s32.totalorder %s1290_s12, %s1290_s12 }
   0x5   :  { %p1297_p3 = por %p1296_p2, %p1295_p1 }
   0x7   :  { %p1298_p4 = pnand %p1297_p3, %p1291_p0 }
   0x9   :  { %1301 = shalt.err (!%p1298_p4)
}
   0xa   :  { %s1328_s13 = smov [#allocation2]  }
   0xb   :  { %41 = dma.vmem_to_smem %s39_s11, 16, %s1328_s13, [#allocation4]  }
   0xc   :  { %1324 = dma.done.wait [#allocation4], 16  }
   0xd   :  { %1325 = vsyncadd [#allocation4], 4294967280 }
   0xe   :  { %45 = sfence }
   0xf   :  { %v130_v0 = vld [vmem:[%s1628_s3] sm:$0xff]  ;;  %v1329_v2 = vmov 0   ;;  %v131_v3 = vld [vmem:[%s1628_s3 + $0x8] sm:$0xff]  ;;  %v132_v9 = vld [vmem:[%s1628_s3 + $0x10] sm:$0xff]  ;;  %v1330_v21 = vmov 0.0   ;;  %v72_v22 = vlaneseq  ;;  %vm256_vm0 = vcmask 261120  }
  0x10   :  { %v47_v1 = vld [vmem:[%s1626_s1] sm:$0xff]  ;;  %1161 = vset.pattern.permute.xlu1 %v1329_v2  ;;  %1160 = vset.pattern.permute.xlu0 %v1329_v2  ;;  %v48_v4 = vld [vmem:[%s1626_s1 + $0x8] sm:$0xff]  ;;  %v133_v10 = vld [vmem:[%s1628_s3 + $0x18] sm:$0xff]  ;;  %s1090_s15 = sld [smem:[#allocation2 + $0x1]]  ;;  %s997_s16 = sld [smem:[#allocation2]] }
  0x11   :  { %136 = vperm.xlu0 %1160, %v130_v0   ;;  %53 = vperm.xlu1 %1161, %v47_v1   ;;  %v180_v5 = vld [vmem:[%s1629_s4] sm:$0xff]  ;;  %v181_v6 = vld [vmem:[%s1629_s4 + $0x8] sm:$0xff]  ;;  %v49_v11 = vld [vmem:[%s1626_s1 + $0x10] sm:$0xff]  ;;  %v1449_v23 = vshrl.u32 %v72_v22, 7  ;;  %vm1021_vm1 = vcmp.lt.s32.totalorder %v72_v22, 256 }
  0x12   :  { %v98_v7 = vld [vmem:[%s1627_s2] sm:$0xff]  ;;  %v99_v8 = vld [vmem:[%s1627_s2 + $0x8] sm:$0xff]  ;;  %v50_v12 = vld [vmem:[%s1626_s1 + $0x18] sm:$0xff]  ;;  %422 = vmatprep.mubr.f32.mxu1 %v1330_v21  ;;  %333 = vmatprep.mubr.f32.mxu0 %v1330_v21 }
  0x13   :  { %v182_v13 = vld [vmem:[%s1629_s4 + $0x10] sm:$0xff]  ;;  %v183_v14 = vld [vmem:[%s1629_s4 + $0x18] sm:$0xff]  ;;  %v232_v17 = vld [vmem:[%s1631_s6] sm:$0xff]  ;;  %v156_v24 = vsub.s32 1, %v1449_v23  ;;  %v160_v25 = vsub.s32 3, %v1449_v23  ;;  %v74_v27 = vsub.s32 0, %v1449_v23 }
  0x14   :  { %v100_v15 = vld [vmem:[%s1627_s2 + $0x10] sm:$0xff]  ;;  %v101_v16 = vld [vmem:[%s1627_s2 + $0x18] sm:$0xff]  ;;  %v233_v18 = vld [vmem:[%s1631_s6 + $0x8] sm:$0xff]  ;;  %v78_v30 = vsub.s32 2, %v1449_v23 }
  0x15   :  { %141 = vperm.xlu0 %1160, %v131_v3   ;;  %58 = vperm.xlu1 %1161, %v48_v4   ;;  %v234_v19 = vld [vmem:[%s1631_s6 + $0x10] sm:$0xff]  ;;  %v235_v20 = vld [vmem:[%s1631_s6 + $0x18] sm:$0xff]  ;;  %v46_v26 = vld [vmem:[%s1625_s0] sm:$0xf] }
  0x16   :  { %v157_v28 = vrot.slane %v46_v26, %v156_v24  ;;  %v161_v29 = vrot.slane %v46_v26, %v160_v25  ;;  %v75_v33 = vrot.slane %v46_v26, %v74_v27  ;;  %v79_v36 = vrot.slane %v46_v26, %v78_v30 }
  0x18   :  { %v167_v34 = vrot.slane %v157_v28, %v156_v24  ;;  %v171_v35 = vrot.slane %v161_v29, %v156_v24  ;;  %v85_v39 = vrot.slane %v75_v33, %v74_v27  ;;  %v89_v42 = vrot.slane %v79_v36, %v74_v27 }
  0x19   :  { %186 = vperm.xlu0 %1160, %v180_v5   ;;  %191 = vperm.xlu1 %1161, %v181_v6  }
  0x1d   :  { %104 = vperm.xlu0 %1160, %v98_v7   ;;  %109 = vperm.xlu1 %1161, %v99_v8  }
  0x21   :  { %146 = vperm.xlu0 %1160, %v132_v9   ;;  %151 = vperm.xlu1 %1161, %v133_v10  }
  0x25   :  { %63 = vperm.xlu0 %1160, %v49_v11   ;;  %68 = vperm.xlu1 %1161, %v50_v12  }
  0x29   :  { %196 = vperm.xlu0 %1160, %v182_v13   ;;  %201 = vperm.xlu1 %1161, %v183_v14  }
  0x2d   :  { %114 = vperm.xlu0 %1160, %v100_v15   ;;  %119 = vperm.xlu1 %1161, %v101_v16  }
  0x31   :  { %238 = vperm.xlu0 %1160, %v232_v17   ;;  %243 = vperm.xlu1 %1161, %v233_v18  }
  0x35   :  { %248 = vperm.xlu0 %1160, %v234_v19   ;;  %253 = vperm.xlu1 %1161, %v235_v20  }
  0x90   :  { %v137_v31 = vpop.permute.xlu0 %136  ;;  %v54_v32 = vpop.permute.xlu1 %53 }
  0x91   :  { %v172_v40 = vmul.f32 %v167_v34, %v137_v31  ;;  %v173_v41 = vmul.f32 %v171_v35, %v137_v31  ;;  %v90_v51 = vmul.f32 %v85_v39, %v54_v32  ;;  %v91_v52 = vmul.f32 %v89_v42, %v54_v32 }
  0x94   :  { %v142_v37 = vpop.permute.xlu0 %141  ;;  %v59_v38 = vpop.permute.xlu1 %58 }
  0x95   :  { %v174_v43 = vmul.f32 %v167_v34, %v142_v37  ;;  %v175_v44 = vmul.f32 %v171_v35, %v142_v37  ;;  %v92_v53 = vmul.f32 %v85_v39, %v59_v38  ;;  %v93_v54 = vmul.f32 %v89_v42, %v59_v38 }
  0x98   :  { %v187_v45 = vpop.permute.xlu0 %186  ;;  %v192_v46 = vpop.permute.xlu1 %191 }
  0x99   :  { %v204_v47 = vadd.f32 %v187_v45, %v172_v40  ;;  %v205_v48 = vadd.f32 %v187_v45, %v173_v41  ;;  %v206_v49 = vadd.f32 %v192_v46, %v174_v43  ;;  %v207_v50 = vadd.f32 %v192_v46, %v175_v44  ;;  %v1461_v46 = vld [vmem:[%s1630_s5] sm:$0xff] }
  0x9b   :  { %1162 = vtanh.f32 %v204_v47 }
  0x9c   :  { %1164 = vtanh.f32 %v205_v48  ;;  %v105_v55 = vpop.permute.xlu0 %104  ;;  %v110_v56 = vpop.permute.xlu1 %109 }
  0x9d   :  { %1166 = vtanh.f32 %v206_v49  ;;  %v122_v57 = vadd.f32 %v105_v55, %v90_v51  ;;  %v123_v58 = vadd.f32 %v105_v55, %v91_v52  ;;  %v124_v59 = vadd.f32 %v110_v56, %v92_v53  ;;  %v1469_v49 = vld [vmem:[%s1630_s5 + $0x8] sm:$0xff]  ;;  %v1491_v51 = vld [vmem:[%s1630_s5 + $0x18] sm:$0xff] }
  0x9e   :  { %1168 = vtanh.f32 %v207_v50  ;;  %v125_v60 = vadd.f32 %v110_v56, %v93_v54  ;;  %v1480_v50 = vld [vmem:[%s1630_s5 + $0x10] sm:$0xff] }
  0x9f   :  { %1170 = vtanh.f32 %v122_v57 }
  0xa0   :  { %1172 = vtanh.f32 %v123_v58  ;;  %v147_v61 = vpop.permute.xlu0 %146  ;;  %v152_v62 = vpop.permute.xlu1 %151 }
  0xa1   :  { %1174 = vtanh.f32 %v124_v59  ;;  %v176_v4 = vmul.f32 %v167_v34, %v147_v61  ;;  %v177_v5 = vmul.f32 %v171_v35, %v147_v61  ;;  %v178_v6 = vmul.f32 %v167_v34, %v152_v62 }
  0xa2   :  { %1176 = vtanh.f32 %v125_v60  ;;  %v179_v8 = vmul.f32 %v171_v35, %v152_v62 }
  0xa4   :  { %v64_v63 = vpop.permute.xlu0 %63  ;;  %v69_v0 = vpop.permute.xlu1 %68 }
  0xa5   :  { %v1163_v1 = vpop.eup %1162  ;;  %v94_v20 = vmul.f32 %v85_v39, %v64_v63  ;;  %v95_v24 = vmul.f32 %v89_v42, %v64_v63  ;;  %v96_v25 = vmul.f32 %v85_v39, %v69_v0  ;;  %v97_v27 = vmul.f32 %v89_v42, %v69_v0 }
  0xa6   :  { %v1165_v2 = vpop.eup %1164 }
  0xa7   :  { %v1167_v3 = vpop.eup %1166 }
  0xa8   :  { %v1169_v7 = vpop.eup %1168  ;;  %v197_v9 = vpop.permute.xlu0 %196  ;;  %v1101_v15 = vpack.c.bf16 %v1167_v3, %v1163_v1 }
  0xa9   :  { %v202_v10 = vpop.permute.xlu1 %201  ;;  %v1171_v11 = vpop.eup %1170  ;;  %v208_v12 = vadd.f32 %v197_v9, %v176_v4  ;;  %v209_v13 = vadd.f32 %v197_v9, %v177_v5  ;;  %v1099_v18 = vpack.c.bf16 %v1169_v7, %v1165_v2 }
  0xaa   :  { %v210_v14 = vadd.f32 %v202_v10, %v178_v6  ;;  %v1173_v16 = vpop.eup %1172  ;;  %v211_v17 = vadd.f32 %v202_v10, %v179_v8 }
  0xab   :  { %v1175_v19 = vpop.eup %1174  ;;  %1178 = vtanh.f32 %v208_v12  ;;  %1100 = vmatprep.subr.bf16.mxu1 %v1099_v18 }
  0xac   :  { %v1177_v26 = vpop.eup %1176  ;;  %1180 = vtanh.f32 %v209_v13  ;;  %v115_v28 = vpop.permute.xlu0 %114  ;;  %v1093_v30 = vpack.c.bf16 %v1175_v19, %v1171_v11  ;;  %1102 = vmatpush1.bf16.msra.mxu1 %v1101_v15 }
  0xad   :  { %v120_v29 = vpop.permute.xlu1 %119  ;;  %1182 = vtanh.f32 %v210_v14  ;;  %v126_v31 = vadd.f32 %v115_v28, %v94_v20  ;;  %v127_v32 = vadd.f32 %v115_v28, %v95_v24  ;;  %v1091_v35 = vpack.c.bf16 %v1177_v26, %v1173_v16 }
  0xae   :  { %v128_v33 = vadd.f32 %v120_v29, %v96_v25  ;;  %1184 = vtanh.f32 %v211_v17  ;;  %v129_v34 = vadd.f32 %v120_v29, %v97_v27 }
  0xaf   :  { %1186 = vtanh.f32 %v126_v31  ;;  %1092 = vmatprep.subr.bf16.mxu0 %v1091_v35 }
  0xb0   :  { %1188 = vtanh.f32 %v127_v32  ;;  %1094 = vmatpush1.bf16.msra.mxu0 %v1093_v30  ;;  %v1502_v52 = vpop.permute.xlu0 %238 }
  0xb1   :  { %1190 = vtanh.f32 %v128_v33  ;;  %v1506_v57 = vpop.permute.xlu1 %243 }
  0xb2   :  { %1192 = vtanh.f32 %v129_v34 }
  0xb4   :  { %v1512_v2 = vpop.permute.xlu0 %248 }
  0xb5   :  { %v1179_v36 = vpop.eup %1178  ;;  %v1518_v11 = vpop.permute.xlu1 %253 }
  0xb6   :  { %v1181_v37 = vpop.eup %1180 }
  0xb7   :  { %v1183_v38 = vpop.eup %1182 }
  0xb8   :  { %v1185_v39 = vpop.eup %1184  ;;  %v1105_v40 = vpack.c.bf16 %v1183_v38, %v1179_v36 }
  0xb9   :  { %v1187_v41 = vpop.eup %1186  ;;  %v1103_v42 = vpack.c.bf16 %v1185_v39, %v1181_v37 }
  0xba   :  { %v1189_v43 = vpop.eup %1188 }
  0xbb   :  { %v1191_v44 = vpop.eup %1190  ;;  %1104 = vmatprep.subr.bf16.mxu1 %v1103_v42 }
  0xbc   :  { %v1193_v45 = vpop.eup %1192  ;;  %1106 = vmatpush1.bf16.msra.mxu1 %v1105_v40  ;;  %v1097_v47 = vpack.c.bf16 %v1191_v44, %v1187_v41 }
  0xbd   :  { %v1095_v48 = vpack.c.bf16 %v1193_v45, %v1189_v43 }
  0xbf   :  { %1096 = vmatprep.subr.bf16.mxu0 %v1095_v48  ;;  %1068 = vmatmul.mubr.msk.f32.vlgmr.msra.gmra.mrb[0].mxu1 %vm256_vm0, %v1461_v46 }
  0xc0   :  { %1098 = vmatpush1.bf16.msra.mxu0 %v1097_v47  ;;  %428 = vmatprep.mubr.f32.mxu1 %v1330_v21 }
  0xc3   :  { %1064 = vmatmul.mubr.msk.f32.vlgmr.msra.gmra.mrb[0].mxu0 %vm256_vm0, %v1461_v46  ;;  %1069 = vmatmul.mubr.msk.f32.gmra.mrb[2].mxu1 %vm256_vm0, %v1469_v49 }
  0xc4   :  { %339 = vmatprep.mubr.f32.mxu0 %v1330_v21  ;;  %434 = vmatprep.mubr.f32.mxu1 %v1330_v21 }
  0xc7   :  { %1065 = vmatmul.mubr.msk.f32.gmra.mrb[2].mxu0 %vm256_vm0, %v1469_v49  ;;  %1070 = vmatmul.mubr.msk.f32.gmra.mrb[4].mxu1 %vm256_vm0, %v1480_v50 }
  0xc8   :  { %345 = vmatprep.mubr.f32.mxu0 %v1330_v21  ;;  %440 = vmatprep.mubr.f32.mxu1 %v1330_v21 }
  0xcb   :  { %1066 = vmatmul.mubr.msk.f32.gmra.mrb[4].mxu0 %vm256_vm0, %v1480_v50  ;;  %1071 = vmatmul.mubr.msk.f32.gmra.mrb[6].mxu1 %vm256_vm0, %v1491_v51 }
  0xcc   :  { %351 = vmatprep.mubr.f32.mxu0 %v1330_v21  ;;  %616 = vmatprep.mubr.f32.mxu1 %v1330_v21 }
  0xcf   :  { %1067 = vmatmul.mubr.msk.f32.gmra.mrb[6].mxu0 %vm256_vm0, %v1491_v51 }
  0xd0   :  { %527 = vmatprep.mubr.f32.mxu0 %v1330_v21 }
 0x192   :  { %v424_v53 = vpop.f32.mrb[0].mxu1 }
 0x193   :  { %v425_v54 = vadd.f32 %v424_v53, %v1502_v52  ;;  %v426_v55 = vpop.f32.mrb[1].mxu1 }
 0x194   :  { %v427_v56 = vadd.f32 %v426_v55, %v1502_v52 }
 0x195   :  { %1194 = vtanh.f32 %v425_v54 }
 0x196   :  { %v335_v58 = vpop.f32.mrb[0].mxu0  ;;  %v430_v59 = vpop.f32.mrb[2].mxu1  ;;  %1196 = vtanh.f32 %v427_v56 }
 0x197   :  { %v336_v60 = vadd.f32 %v335_v58, %v1502_v52  ;;  %v431_v61 = vadd.f32 %v430_v59, %v1506_v57  ;;  %v337_v62 = vpop.f32.mrb[1].mxu0  ;;  %v432_v63 = vpop.f32.mrb[3].mxu1 }
 0x198   :  { %v338_v0 = vadd.f32 %v337_v62, %v1502_v52  ;;  %v433_v1 = vadd.f32 %v432_v63, %v1506_v57 }
 0x199   :  { %1198 = vtanh.f32 %v336_v60 }
 0x19a   :  { %1200 = vtanh.f32 %v431_v61  ;;  %v341_v3 = vpop.f32.mrb[2].mxu0  ;;  %v436_v4 = vpop.f32.mrb[4].mxu1 }
 0x19b   :  { %1202 = vtanh.f32 %v338_v0  ;;  %v342_v5 = vadd.f32 %v341_v3, %v1506_v57  ;;  %v437_v6 = vadd.f32 %v436_v4, %v1512_v2  ;;  %v343_v7 = vpop.f32.mrb[3].mxu0  ;;  %v438_v8 = vpop.f32.mrb[5].mxu1 }
 0x19c   :  { %1204 = vtanh.f32 %v433_v1  ;;  %v344_v9 = vadd.f32 %v343_v7, %v1506_v57  ;;  %v439_v10 = vadd.f32 %v438_v8, %v1512_v2 }
 0x19d   :  { %1206 = vtanh.f32 %v342_v5 }
 0x19e   :  { %1208 = vtanh.f32 %v437_v6  ;;  %v347_v12 = vpop.f32.mrb[4].mxu0  ;;  %v442_v13 = vpop.f32.mrb[6].mxu1 }
 0x19f   :  { %1210 = vtanh.f32 %v344_v9  ;;  %v348_v14 = vadd.f32 %v347_v12, %v1512_v2  ;;  %v443_v15 = vadd.f32 %v442_v13, %v1518_v11  ;;  %v349_v16 = vpop.f32.mrb[5].mxu0  ;;  %v444_v17 = vpop.f32.mrb[7].mxu1 }
 0x1a0   :  { %1212 = vtanh.f32 %v439_v10  ;;  %v350_v18 = vadd.f32 %v349_v16, %v1512_v2  ;;  %v445_v19 = vadd.f32 %v444_v17, %v1518_v11  ;;  %v1195_v20 = vpop.eup %1194 }
 0x1a1   :  { %1214 = vtanh.f32 %v348_v14  ;;  %v1197_v24 = vpop.eup %1196 }
 0x1a2   :  { %1216 = vtanh.f32 %v443_v15  ;;  %v353_v25 = vpop.f32.mrb[6].mxu0 }
 0x1a3   :  { %v1199_v26 = vpop.eup %1198  ;;  %1218 = vtanh.f32 %v350_v18  ;;  %v354_v27 = vadd.f32 %v353_v25, %v1518_v11  ;;  %v355_v28 = vpop.f32.mrb[7].mxu0 }
 0x1a4   :  { %v1201_v29 = vpop.eup %1200  ;;  %1220 = vtanh.f32 %v445_v19  ;;  %v356_v30 = vadd.f32 %v355_v28, %v1518_v11 }
 0x1a5   :  { %v1203_v31 = vpop.eup %1202  ;;  %1222 = vtanh.f32 %v354_v27  ;;  %v1117_v32 = vpack.c.bf16 %v1201_v29, %v1195_v20 }
 0x1a6   :  { %v1205_v33 = vpop.eup %1204  ;;  %1224 = vtanh.f32 %v356_v30 }
 0x1a7   :  { %v1207_v34 = vpop.eup %1206  ;;  %v1115_v35 = vpack.c.bf16 %v1205_v33, %v1197_v24 }
 0x1a8   :  { %v1209_v36 = vpop.eup %1208  ;;  %v1109_v37 = vpack.c.bf16 %v1207_v34, %v1199_v26 }
 0x1a9   :  { %v1211_v38 = vpop.eup %1210  ;;  %1116 = vmatprep.subr.bf16.mxu1 %v1115_v35 }
 0x1aa   :  { %v1213_v39 = vpop.eup %1212  ;;  %1118 = vmatpush1.bf16.msra.mxu1 %v1117_v32  ;;  %v1107_v40 = vpack.c.bf16 %v1211_v38, %v1203_v31 }
 0x1ab   :  { %v1215_v41 = vpop.eup %1214 }
 0x1ac   :  { %v1217_v42 = vpop.eup %1216  ;;  %1108 = vmatprep.subr.bf16.mxu0 %v1107_v40 }
 0x1ad   :  { %v1219_v43 = vpop.eup %1218  ;;  %1110 = vmatpush1.bf16.msra.mxu0 %v1109_v37  ;;  %v1121_v44 = vpack.c.bf16 %v1217_v42, %v1209_v36 }
 0x1ae   :  { %v1221_v45 = vpop.eup %1220 }
 0x1af   :  { %v1223_v47 = vpop.eup %1222  ;;  %v1119_v48 = vpack.c.bf16 %v1221_v45, %v1213_v39 }
 0x1b0   :  { %v1225_v53 = vpop.eup %1224  ;;  %v1113_v54 = vpack.c.bf16 %v1223_v47, %v1215_v41 }
 0x1b1   :  { %1120 = vmatprep.subr.bf16.mxu1 %v1119_v48  ;;  %v1111_v55 = vpack.c.bf16 %v1225_v53, %v1219_v43 }
 0x1b2   :  { %1122 = vmatpush1.bf16.msra.mxu1 %v1121_v44 }
 0x1b3   :  { %1112 = vmatprep.subr.bf16.mxu0 %v1111_v55 }
 0x1b4   :  { %1114 = vmatpush1.bf16.msra.mxu0 %v1113_v54 }
 0x1b5   :  { %1076 = vmatmul.mubr.msk.f32.vlgmr.msra.gmra.mrb[8].mxu1 %vm256_vm0, %v1461_v46 }
 0x1b6   :  { %622 = vmatprep.mubr.f32.mxu1 %v1330_v21 }
 0x1b7   :  { %1072 = vmatmul.mubr.msk.f32.vlgmr.msra.gmra.mrb[8].mxu0 %vm256_vm0, %v1461_v46 }
 0x1b8   :  { %533 = vmatprep.mubr.f32.mxu0 %v1330_v21 }
 0x1b9   :  { %1077 = vmatmul.mubr.msk.f32.gmra.mrb[10].mxu1 %vm256_vm0, %v1469_v49 }
 0x1ba   :  { %628 = vmatprep.mubr.f32.mxu1 %v1330_v21 }
 0x1bb   :  { %1073 = vmatmul.mubr.msk.f32.gmra.mrb[10].mxu0 %vm256_vm0, %v1469_v49 }
 0x1bc   :  { %539 = vmatprep.mubr.f32.mxu0 %v1330_v21 }
 0x1bd   :  { %1078 = vmatmul.mubr.msk.f32.gmra.mrb[12].mxu1 %vm256_vm0, %v1480_v50 }
 0x1be   :  { %634 = vmatprep.mubr.f32.mxu1 %v1330_v21 }
 0x1bf   :  { %1074 = vmatmul.mubr.msk.f32.gmra.mrb[12].mxu0 %vm256_vm0, %v1480_v50 }
 0x1c0   :  { %545 = vmatprep.mubr.f32.mxu0 %v1330_v21 }
 0x1c1   :  { %1079 = vmatmul.mubr.msk.f32.gmra.mrb[14].mxu1 %vm256_vm0, %v1491_v51 }
 0x1c2   :  { %810 = vmatprep.mubr.f32.mxu1 %v1330_v21 }
 0x1c3   :  { %1075 = vmatmul.mubr.msk.f32.gmra.mrb[14].mxu0 %vm256_vm0, %v1491_v51 }
 0x1c4   :  { %721 = vmatprep.mubr.f32.mxu0 %v1330_v21 }
 0x288   :  { %v618_v56 = vpop.f32.mrb[8].mxu1 }
 0x289   :  { %v619_v58 = vadd.f32 %v618_v56, %v1502_v52  ;;  %v620_v59 = vpop.f32.mrb[9].mxu1 }
 0x28a   :  { %v621_v60 = vadd.f32 %v620_v59, %v1502_v52  ;;  %v529_v61 = vpop.f32.mrb[8].mxu0 }
 0x28b   :  { %1226 = vtanh.f32 %v619_v58  ;;  %v530_v62 = vadd.f32 %v529_v61, %v1502_v52  ;;  %v531_v63 = vpop.f32.mrb[9].mxu0 }
 0x28c   :  { %1228 = vtanh.f32 %v621_v60  ;;  %v624_v0 = vpop.f32.mrb[10].mxu1  ;;  %v532_v1 = vadd.f32 %v531_v63, %v1502_v52 }
 0x28d   :  { %1230 = vtanh.f32 %v530_v62  ;;  %v625_v3 = vadd.f32 %v624_v0, %v1506_v57  ;;  %v626_v4 = vpop.f32.mrb[11].mxu1 }
 0x28e   :  { %1232 = vtanh.f32 %v532_v1  ;;  %v627_v5 = vadd.f32 %v626_v4, %v1506_v57  ;;  %v535_v6 = vpop.f32.mrb[10].mxu0 }
 0x28f   :  { %1234 = vtanh.f32 %v625_v3  ;;  %v536_v7 = vadd.f32 %v535_v6, %v1506_v57  ;;  %v537_v8 = vpop.f32.mrb[11].mxu0 }
 0x290   :  { %1236 = vtanh.f32 %v627_v5  ;;  %v630_v9 = vpop.f32.mrb[12].mxu1  ;;  %v538_v10 = vadd.f32 %v537_v8, %v1506_v57 }
 0x291   :  { %1238 = vtanh.f32 %v536_v7  ;;  %v631_v12 = vadd.f32 %v630_v9, %v1512_v2  ;;  %v632_v13 = vpop.f32.mrb[13].mxu1 }
 0x292   :  { %1240 = vtanh.f32 %v538_v10  ;;  %v633_v14 = vadd.f32 %v632_v13, %v1512_v2  ;;  %v541_v15 = vpop.f32.mrb[12].mxu0 }
 0x293   :  { %1242 = vtanh.f32 %v631_v12  ;;  %v542_v16 = vadd.f32 %v541_v15, %v1512_v2  ;;  %v543_v17 = vpop.f32.mrb[13].mxu0 }
 0x294   :  { %1244 = vtanh.f32 %v633_v14  ;;  %v636_v18 = vpop.f32.mrb[14].mxu1  ;;  %v544_v19 = vadd.f32 %v543_v17, %v1512_v2 }
 0x295   :  { %v1227_v20 = vpop.eup %1226  ;;  %1246 = vtanh.f32 %v542_v16  ;;  %v637_v24 = vadd.f32 %v636_v18, %v1518_v11  ;;  %v638_v25 = vpop.f32.mrb[15].mxu1 }
 0x296   :  { %v1229_v26 = vpop.eup %1228  ;;  %1248 = vtanh.f32 %v544_v19  ;;  %v639_v27 = vadd.f32 %v638_v25, %v1518_v11  ;;  %v547_v28 = vpop.f32.mrb[14].mxu0 }
 0x297   :  { %v1231_v29 = vpop.eup %1230  ;;  %1250 = vtanh.f32 %v637_v24  ;;  %v548_v30 = vadd.f32 %v547_v28, %v1518_v11  ;;  %v549_v31 = vpop.f32.mrb[15].mxu0 }
 0x298   :  { %v1233_v32 = vpop.eup %1232  ;;  %1252 = vtanh.f32 %v639_v27  ;;  %v550_v33 = vadd.f32 %v549_v31, %v1518_v11 }
 0x299   :  { %v1235_v34 = vpop.eup %1234  ;;  %1254 = vtanh.f32 %v548_v30 }
 0x29a   :  { %v1237_v35 = vpop.eup %1236  ;;  %1256 = vtanh.f32 %v550_v33  ;;  %v1133_v36 = vpack.c.bf16 %v1235_v34, %v1227_v20 }
 0x29b   :  { %v1239_v37 = vpop.eup %1238  ;;  %v1131_v38 = vpack.c.bf16 %v1237_v35, %v1229_v26 }
 0x29c   :  { %v1241_v39 = vpop.eup %1240  ;;  %v1125_v40 = vpack.c.bf16 %v1239_v37, %v1231_v29 }
 0x29d   :  { %v1243_v41 = vpop.eup %1242  ;;  %1132 = vmatprep.subr.bf16.mxu1 %v1131_v38  ;;  %v1123_v42 = vpack.c.bf16 %v1241_v39, %v1233_v32 }
 0x29e   :  { %v1245_v43 = vpop.eup %1244  ;;  %1134 = vmatpush1.bf16.msra.mxu1 %v1133_v36 }
 0x29f   :  { %v1247_v44 = vpop.eup %1246  ;;  %1124 = vmatprep.subr.bf16.mxu0 %v1123_v42 }
 0x2a0   :  { %v1249_v45 = vpop.eup %1248  ;;  %1126 = vmatpush1.bf16.msra.mxu0 %v1125_v40 }
 0x2a1   :  { %v1251_v47 = vpop.eup %1250 }
 0x2a2   :  { %v1253_v48 = vpop.eup %1252  ;;  %v1137_v53 = vpack.c.bf16 %v1251_v47, %v1243_v41 }
 0x2a3   :  { %v1255_v54 = vpop.eup %1254  ;;  %v1135_v55 = vpack.c.bf16 %v1253_v48, %v1245_v43 }
 0x2a4   :  { %v1257_v56 = vpop.eup %1256  ;;  %v1129_v58 = vpack.c.bf16 %v1255_v54, %v1247_v44  ;;  %v1331_v54 = vmov 1966171168  }
 0x2a5   :  { %1136 = vmatprep.subr.bf16.mxu1 %v1135_v55  ;;  %v1127_v59 = vpack.c.bf16 %v1257_v56, %v1249_v45  ;;  %v1005_v55 = vunpack.c.l.s4 %v1331_v54  ;;  %v1025_v56 = vstv %s1090_s15 }
 0x2a6   :  { %1138 = vmatpush1.bf16.msra.mxu1 %v1137_v53  ;;  %v851_v53 = vld [vmem:[%s1632_s7] sm:$0x3]  ;;  %s1332_s7 = smov [#allocation5]  }
 0x2a7   :  { %1128 = vmatprep.subr.bf16.mxu0 %v1127_v59  ;;  %s1055_s17 = sshll.u32 %s1332_s7, 4  ;;  %s1056_s17 = int_to_ptr.vmem [resolvable:$true] %s1055_s17 }
 0x2a8   :  { %1130 = vmatpush1.bf16.msra.mxu0 %v1129_v58  ;;  %v1006_v58 = vunpack.c.0.s8 %v1005_v55  ;;  %s1302_s8 = scalar_lea.vmem %s1056_s17, 64  ;;  %p1307_p6 = scmp.lt.s32.totalorder %s1056_s17, %s1056_s17 }
 0x2a9   :  { %1084 = vmatmul.mubr.msk.f32.vlgmr.msra.gmra.mrb[16].mxu1 %vm256_vm0, %v1461_v46  ;;  %p1303_p5 = scmp.ne.s32.totalorder %s1056_s17, %s1302_s8  ;;  %p1308_p7 = scmp.lt.s32.totalorder %s1302_s8, %s1302_s8 }
 0x2aa   :  { %816 = vmatprep.mubr.f32.mxu1 %v1330_v21 }
 0x2ab   :  { %1080 = vmatmul.mubr.msk.f32.vlgmr.msra.gmra.mrb[16].mxu0 %vm256_vm0, %v1461_v46  ;;  %p1309_p8 = por %p1308_p7, %p1307_p6 }
 0x2ac   :  { %727 = vmatprep.mubr.f32.mxu0 %v1330_v21 }
 0x2ad   :  { %1085 = vmatmul.mubr.msk.f32.gmra.mrb[18].mxu1 %vm256_vm0, %v1469_v49  ;;  %p1310_p9 = pnand %p1309_p8, %p1303_p5 }
 0x2ae   :  { %822 = vmatprep.mubr.f32.mxu1 %v1330_v21 }
 0x2af   :  { %1081 = vmatmul.mubr.msk.f32.gmra.mrb[18].mxu0 %vm256_vm0, %v1469_v49 }
 0x2b0   :  { %733 = vmatprep.mubr.f32.mxu0 %v1330_v21 }
 0x2b1   :  { %1086 = vmatmul.mubr.msk.f32.gmra.mrb[20].mxu1 %vm256_vm0, %v1480_v50 }
 0x2b2   :  { %828 = vmatprep.mubr.f32.mxu1 %v1330_v21 }
 0x2b3   :  { %1082 = vmatmul.mubr.msk.f32.gmra.mrb[20].mxu0 %vm256_vm0, %v1480_v50 }
 0x2b4   :  { %739 = vmatprep.mubr.f32.mxu0 %v1330_v21 }
 0x2b5   :  { %1087 = vmatmul.mubr.msk.f32.gmra.mrb[22].mxu1 %vm256_vm0, %v1491_v51 }
 0x2b6   :  { %990 = vmatprep.mubr.f32.mxu1 %v1330_v21 }
 0x2b7   :  { %1083 = vmatmul.mubr.msk.f32.gmra.mrb[22].mxu0 %vm256_vm0, %v1491_v51 }
 0x2b8   :  { %919 = vmatprep.mubr.f32.mxu0 %v1330_v21 }
 0x37c   :  { %v812_v46 = vpop.f32.mrb[16].mxu1 }
 0x37d   :  { %v813_v49 = vadd.f32 %v812_v46, %v1502_v52  ;;  %v814_v60 = vpop.f32.mrb[17].mxu1  ;;  %v998_v46 = vstv %s997_s16 }
 0x37e   :  { %v815_v61 = vadd.f32 %v814_v60, %v1502_v52  ;;  %v723_v62 = vpop.f32.mrb[16].mxu0 }
 0x37f   :  { %1258 = vtanh.f32 %v813_v49  ;;  %v724_v50 = vadd.f32 %v723_v62, %v1502_v52  ;;  %v725_v63 = vpop.f32.mrb[17].mxu0 }
 0x380   :  { %1260 = vtanh.f32 %v815_v61  ;;  %v818_v0 = vpop.f32.mrb[18].mxu1  ;;  %v726_v1 = vadd.f32 %v725_v63, %v1502_v52  ;;  %v1009_v61 = vsub.s32 %v1006_v58, %v1449_v23 }
 0x381   :  { %1262 = vtanh.f32 %v724_v50  ;;  %v819_v51 = vadd.f32 %v818_v0, %v1506_v57  ;;  %v820_v3 = vpop.f32.mrb[19].mxu1 }
 0x382   :  { %1264 = vtanh.f32 %v726_v1  ;;  %v821_v21 = vadd.f32 %v820_v3, %v1506_v57  ;;  %v729_v4 = vpop.f32.mrb[18].mxu0 }
 0x383   :  { %1266 = vtanh.f32 %v819_v51  ;;  %v730_v5 = vadd.f32 %v729_v4, %v1506_v57  ;;  %v731_v6 = vpop.f32.mrb[19].mxu0 }
 0x384   :  { %1268 = vtanh.f32 %v821_v21  ;;  %v824_v7 = vpop.f32.mrb[20].mxu1  ;;  %v732_v8 = vadd.f32 %v731_v6, %v1506_v57 }
 0x385   :  { %1270 = vtanh.f32 %v730_v5  ;;  %v825_v9 = vadd.f32 %v824_v7, %v1512_v2  ;;  %v826_v52 = vpop.f32.mrb[21].mxu1 }
 0x386   :  { %1272 = vtanh.f32 %v732_v8  ;;  %v827_v10 = vadd.f32 %v826_v52, %v1512_v2  ;;  %v735_v12 = vpop.f32.mrb[20].mxu0 }
 0x387   :  { %1274 = vtanh.f32 %v825_v9  ;;  %v736_v13 = vadd.f32 %v735_v12, %v1512_v2  ;;  %v737_v14 = vpop.f32.mrb[21].mxu0 }
 0x388   :  { %1276 = vtanh.f32 %v827_v10  ;;  %v830_v15 = vpop.f32.mrb[22].mxu1  ;;  %v738_v16 = vadd.f32 %v737_v14, %v1512_v2 }
 0x389   :  { %v1259_v17 = vpop.eup %1258  ;;  %1278 = vtanh.f32 %v736_v13  ;;  %v831_v57 = vadd.f32 %v830_v15, %v1518_v11  ;;  %v832_v18 = vpop.f32.mrb[23].mxu1 }
 0x38a   :  { %v1261_v19 = vpop.eup %1260  ;;  %1280 = vtanh.f32 %v738_v16  ;;  %v833_v20 = vadd.f32 %v832_v18, %v1518_v11  ;;  %v741_v24 = vpop.f32.mrb[22].mxu0 }
 0x38b   :  { %v1263_v25 = vpop.eup %1262  ;;  %1282 = vtanh.f32 %v831_v57  ;;  %v742_v26 = vadd.f32 %v741_v24, %v1518_v11  ;;  %v743_v27 = vpop.f32.mrb[23].mxu0 }
 0x38c   :  { %v1265_v28 = vpop.eup %1264  ;;  %1284 = vtanh.f32 %v833_v20  ;;  %v744_v29 = vadd.f32 %v743_v27, %v1518_v11 }
 0x38d   :  { %v1267_v2 = vpop.eup %1266  ;;  %1286 = vtanh.f32 %v742_v26 }
 0x38e   :  { %v1269_v30 = vpop.eup %1268  ;;  %1288 = vtanh.f32 %v744_v29  ;;  %v1149_v31 = vpack.c.bf16 %v1267_v2, %v1259_v17 }
 0x38f   :  { %v1271_v32 = vpop.eup %1270  ;;  %v1147_v33 = vpack.c.bf16 %v1269_v30, %v1261_v19 }
 0x390   :  { %v1273_v34 = vpop.eup %1272  ;;  %v1141_v35 = vpack.c.bf16 %v1271_v32, %v1263_v25 }
 0x391   :  { %v1275_v36 = vpop.eup %1274  ;;  %1148 = vmatprep.subr.bf16.mxu1 %v1147_v33  ;;  %v1139_v37 = vpack.c.bf16 %v1273_v34, %v1265_v28 }
 0x392   :  { %v1277_v38 = vpop.eup %1276  ;;  %1150 = vmatpush1.bf16.msra.mxu1 %v1149_v31 }
 0x393   :  { %v1279_v39 = vpop.eup %1278  ;;  %1140 = vmatprep.subr.bf16.mxu0 %v1139_v37 }
 0x394   :  { %v1281_v40 = vpop.eup %1280  ;;  %1142 = vmatpush1.bf16.msra.mxu0 %v1141_v35 }
 0x395   :  { %v1283_v41 = vpop.eup %1282 }
 0x396   :  { %v1285_v11 = vpop.eup %1284  ;;  %v1153_v42 = vpack.c.bf16 %v1283_v41, %v1275_v36 }
 0x397   :  { %v1287_v43 = vpop.eup %1286  ;;  %v1151_v44 = vpack.c.bf16 %v1285_v11, %v1277_v38 }
 0x398   :  { %v1289_v45 = vpop.eup %1288  ;;  %v1145_v47 = vpack.c.bf16 %v1287_v43, %v1279_v39 }
 0x399   :  { %1152 = vmatprep.subr.bf16.mxu1 %v1151_v44  ;;  %v1143_v48 = vpack.c.bf16 %v1289_v45, %v1281_v40 }
 0x39a   :  { %1154 = vmatpush1.bf16.msra.mxu1 %v1153_v42 }
 0x39b   :  { %1144 = vmatprep.subr.bf16.mxu0 %v1143_v48 }
 0x39c   :  { %1146 = vmatpush1.bf16.msra.mxu0 %v1145_v47 }
 0x39d   :  { %1089 = vmatmul.mubr.msk.f32.vlgmr.msra.gmra.mrb[24].mxu1 %vm256_vm0, %v851_v53 }
 0x39f   :  { %1088 = vmatmul.mubr.msk.f32.vlgmr.msra.gmra.mrb[24].mxu0 %vm256_vm0, %v851_v53 }
 0x470   :  { %v992_v59 = vpop.f32.mrb[24].mxu1 }
 0x471   :  { %v1026_v49 = vadd.f32 %v1025_v56, %v992_v59  ;;  %v994_v60 = vpop.f32.mrb[25].mxu1 }
 0x472   :  { %v1027_v62 = vadd.f32 %v1025_v56, %v994_v60  ;;  %v921_v50 = vpop.f32.mrb[24].mxu0 }
 0x473   :  { %v999_v63 = vadd.f32 %v998_v46, %v921_v50  ;;  %v923_v0 = vpop.f32.mrb[25].mxu0 }
 0x474   :  { %v1030_v1 = vcombine.low %v1026_v49, %v1027_v62  ;;  %v1000_v51 = vadd.f32 %v998_v46, %v923_v0 }
 0x476   :  { %v1037_v3 = vrot.slane %v1030_v1, %v1009_v61  ;;  %v1003_v21 = vcombine.low %v999_v63, %v1000_v51 }
 0x478   :  { %v1038_v4 = vcombine.high %v1037_v3, %v1037_v3  ;;  %v1010_v5 = vrot.slane %v1003_v21, %v1009_v61 }
 0x47a   :  { %v1017_v6 = vrot.slane %v1010_v5, %v1009_v61  ;;  %v1045_v7 = vrot.slane %v1038_v4, %v1009_v61 }
 0x47c   :  { %1023 = vst.msk [vmem:[#allocation5] ss:$2 sm:$0x3] %vm1021_vm1, %v1017_v6  ;;  %1048 = vst.msk [vmem:[#allocation5 + $0x1] ss:$2 sm:$0x3] %vm1021_vm1, %v1045_v7 }
 0x47d   :  { %1313 = shalt.err (!%p1310_p9)
}
 0x47e   :  { %s1314_s19 = scalar_lea.hbm %s1634_s9, 64 }
 0x47f   :  { %p1315_p10 = scmp.ne.s32.totalorder %s1634_s9, %s1314_s19  ;;  %p1318_p11 = scmp.lt.u32.totalorder %s1314_s19, %s1634_s9 }
 0x481   :  { %p1320_p12 = pnand %p1318_p11, %p1315_p10 }
 0x483   :  { %1323 = shalt.err (!%p1320_p12)
}
 0x484   :  { %1058 = dma.vmem_to_hbm [thread:$0]  %s1056_s17, 64, %s1634_s9, [#allocation3]  }
 0x485   :  { %1326 = dma.done.wait [#allocation3], 64  }
 0x486   :  { %1327 = vsyncadd [#allocation3], 4294967232 }
 0x487   :  { %1062 = vsyncpa [#allocation3], 1 }
 0x488   :  { %1063 = vsyncpa [#allocation4], 1 }

</bundles_post_ra>
